<compile_context>
chip_gen: v7x
topology: tpu7x:2x2x1
jax: 0.10.0
libtpu: 0.0.40
codegen_flags: <defaults>
</compile_context>

<pallas_src>
import jax
import jax.numpy as jnp
from jax.experimental import pallas as pl
from jax.experimental.pallas import tpu as pltpu

VMEM_LIMIT = 32 * 1024 * 1024


# ----------------------------------------------------------------------------
# helpers: fused / gate-interleaved weight layout
# Combined gate layout (8H columns, width-H blocks):
#   [i_f, i_r, f_f, f_r, g_f, g_r, o_f, o_r]
# Combined state layout (2H): [h_fwd | h_rev]
# ----------------------------------------------------------------------------
def _to_slots(w, H, direction):
    """(D, 4H) per-direction weight/bias (gate order i,f,g,o) -> (D, 8H) slots."""
    D = w.shape[0]
    out = jnp.zeros((D, 8 * H), w.dtype)
    for g in range(4):
        col = (2 * g + direction) * H
        out = out.at[:, col:col + H].set(w[:, g * H:(g + 1) * H])
    return out


def _combine_rows(wf, wr, H):
    """Block-diagonal combine: fwd rows feed fwd slots, rev rows feed rev slots."""
    return jnp.concatenate([_to_slots(wf, H, 0), _to_slots(wr, H, 1)], axis=0)


def _row_tile(rows, cap=512):
    if rows <= cap:
        return rows
    for t in range(cap - cap % 8, 7, -8):
        if rows % t == 0:
            return t
    return rows  # TODO(synk): awkward row counts fall back to a single tile.


# ----------------------------------------------------------------------------
# Pallas kernels
# ----------------------------------------------------------------------------
def gate_precompute_kernel(xf_ref, xr_ref, wf_ref, wr_ref, b_ref, g_ref):
    """Hoisted layer-0 x@Wih for both directions: one big parallel MXU matmul."""
    xf = xf_ref[...].astype(jnp.bfloat16)
    xr = xr_ref[...].astype(jnp.bfloat16)
    g = (jnp.dot(xf, wf_ref[...], preferred_element_type=jnp.float32)
         + jnp.dot(xr, wr_ref[...], preferred_element_type=jnp.float32)
         + b_ref[...])
    g_ref[...] = g


def bilstm_scan_kernel(g_ref, whh0_ref, w1_ref, b1_ref, out_ref,
                       h0_ref, c0_ref, h1_ref, c1_ref):
    """One grid step == one timestep; both layers and both directions fused.

    Carried state (h0, c0, h1, c1) each (B, 2H) = [fwd | rev] lives in VMEM scratch.
    Output block (T, B, 2H) is resident (constant index map) and written back once.
    """
    t = pl.program_id(0)
    T = pl.num_programs(0)
    H2 = h0_ref.shape[-1]          # 2H (both directions)
    H = H2 // 2

    @pl.when(t == 0)
    def _init():
        h0_ref[...] = jnp.zeros_like(h0_ref)
        c0_ref[...] = jnp.zeros_like(c0_ref)
        h1_ref[...] = jnp.zeros_like(h1_ref)
        c1_ref[...] = jnp.zeros_like(c1_ref)

    def lstm_cell(gates, c_prev):
        i = jax.nn.sigmoid(gates[:, 0 * H2:1 * H2])
        f = jax.nn.sigmoid(gates[:, 1 * H2:2 * H2])
        g = jnp.tanh(gates[:, 2 * H2:3 * H2])
        o = jax.nn.sigmoid(gates[:, 3 * H2:4 * H2])
        c_new = f * c_prev + i * g
        h_new = o * jnp.tanh(c_new)
        return h_new, c_new

    # Layer 0 (both directions): precomputed x@Wih (+bias) streamed in, only the
    # recurrent h @ Whh matmul remains in the serial path (single MXU push).
    gates0 = g_ref[0] + jnp.dot(h0_ref[...], whh0_ref[...],
                                preferred_element_type=jnp.float32)
    h0_new, c0_new = lstm_cell(gates0, c0_ref[...])
    h0_ref[...] = h0_new
    c0_ref[...] = c0_new

    # Layer 1 (both directions): fused input/recurrent matmul (single MXU push).
    x1 = jnp.concatenate([h0_new, h1_ref[...]], axis=-1)            # (B, 4H)
    gates1 = jnp.dot(x1, w1_ref[...],
                     preferred_element_type=jnp.float32) + b1_ref[...]
    h1_new, c1_new = lstm_cell(gates1, c1_ref[...])
    h1_ref[...] = h1_new
    c1_ref[...] = c1_new

    # Fused "concat(fwd_l0 + fwd_l1, rev_l0 + rev_l1)" write into the resident
    # output block: fwd half at time t, rev half at original time T-1-t.
    hsum = h0_new + h1_new                                          # (B, 2H)
    out_ref[t, :, pl.ds(0, H)] = hsum[:, 0:H]
    out_ref[T - 1 - t, :, pl.ds(H, H)] = hsum[:, H:H2]


def decoder_kernel(xp_ref, xc_ref, xn_ref, w0_ref, w1_ref, w2_ref, cb_ref,
                   fw_ref, fb_ref, o_ref):
    """k=3 conv as three shifted matmuls + bias + ReLU + final projection, fused."""
    xp = xp_ref[...].astype(jnp.bfloat16)
    xc = xc_ref[...].astype(jnp.bfloat16)
    xn = xn_ref[...].astype(jnp.bfloat16)
    h = (jnp.dot(xp, w0_ref[...], preferred_element_type=jnp.float32)
         + jnp.dot(xc, w1_ref[...], preferred_element_type=jnp.float32)
         + jnp.dot(xn, w2_ref[...], preferred_element_type=jnp.float32)
         + cb_ref[...])
    h = jnp.maximum(h, 0.0)
    logits = jnp.dot(h.astype(jnp.bfloat16), fw_ref[...],
                     preferred_element_type=jnp.float32) + fb_ref[...]
    o_ref[...] = logits


# ----------------------------------------------------------------------------
# pallas_call wrappers
# ----------------------------------------------------------------------------
def gate_precompute(xf, xr, wf, wr, b):
    R, E = xf.shape
    G8 = wf.shape[1]
    RT = _row_tile(R)
    return pl.pallas_call(
        gate_precompute_kernel,
        out_shape=jax.ShapeDtypeStruct((R, G8), jnp.float32),
        grid_spec=pltpu.PrefetchScalarGridSpec(
            num_scalar_prefetch=0,
            grid=(R // RT,),
            in_specs=[
                pl.BlockSpec((RT, E), lambda i: (i, 0)),
                pl.BlockSpec((RT, E), lambda i: (i, 0)),
                pl.BlockSpec((E, G8), lambda i: (0, 0)),
                pl.BlockSpec((E, G8), lambda i: (0, 0)),
                pl.BlockSpec((1, G8), lambda i: (0, 0)),
            ],
            out_specs=pl.BlockSpec((RT, G8), lambda i: (i, 0)),
        ),
        compiler_params=pltpu.CompilerParams(
            dimension_semantics=("parallel",),
            vmem_limit_bytes=VMEM_LIMIT),
    )(xf, xr, wf, wr, b)


def bilstm_scan(g_all, whh0, w1, b1):
    T, B, G8 = g_all.shape
    H2 = G8 // 4
    return pl.pallas_call(
        bilstm_scan_kernel,
        out_shape=jax.ShapeDtypeStruct((T, B, H2), jnp.float32),
        grid_spec=pltpu.PrefetchScalarGridSpec(
            num_scalar_prefetch=0,
            grid=(T,),
            in_specs=[
                pl.BlockSpec((1, B, G8), lambda t: (t, 0, 0)),   # streamed gates
                pl.BlockSpec((H2, G8), lambda t: (0, 0)),        # resident weights
                pl.BlockSpec((2 * H2, G8), lambda t: (0, 0)),
                pl.BlockSpec((1, G8), lambda t: (0, 0)),
            ],
            # constant index map -> resident output, single HBM writeback at end
            out_specs=pl.BlockSpec((T, B, H2), lambda t: (0, 0, 0)),
            scratch_shapes=[pltpu.VMEM((B, H2), jnp.float32)] * 4,
        ),
        compiler_params=pltpu.CompilerParams(
            dimension_semantics=("arbitrary",),
            vmem_limit_bytes=VMEM_LIMIT),
    )(g_all, whh0, w1, b1)


def decoder_apply(xp, xc, xn, w0, w1, w2, cb, fw, fb):
    R, C = xc.shape
    F = w0.shape[1]
    N = fw.shape[1]
    RT = _row_tile(R)
    return pl.pallas_call(
        decoder_kernel,
        out_shape=jax.ShapeDtypeStruct((R, N), jnp.float32),
        grid_spec=pltpu.PrefetchScalarGridSpec(
            num_scalar_prefetch=0,
            grid=(R // RT,),
            in_specs=[
                pl.BlockSpec((RT, C), lambda i: (i, 0)),
                pl.BlockSpec((RT, C), lambda i: (i, 0)),
                pl.BlockSpec((RT, C), lambda i: (i, 0)),
                pl.BlockSpec((C, F), lambda i: (0, 0)),
                pl.BlockSpec((C, F), lambda i: (0, 0)),
                pl.BlockSpec((C, F), lambda i: (0, 0)),
                pl.BlockSpec((1, F), lambda i: (0, 0)),
                pl.BlockSpec((F, N), lambda i: (0, 0)),
                pl.BlockSpec((1, N), lambda i: (0, 0)),
            ],
            out_specs=pl.BlockSpec((RT, N), lambda i: (i, 0)),
        ),
        compiler_params=pltpu.CompilerParams(
            dimension_semantics=("parallel",),
            vmem_limit_bytes=VMEM_LIMIT),
    )(xp, xc, xn, w0, w1, w2, cb, fw, fb)


# ----------------------------------------------------------------------------
# Model (parameter setup + glue in plain JAX, compute in Pallas)
# ----------------------------------------------------------------------------
def init_params(key, *, vocab=25, emb=32, hidden=16, cnn_filters=32, n_classes=8, k=3):
    ks = jax.random.split(key, 16)
    s = 0.1

    def rnd(i, shape):
        return jax.random.normal(ks[i], shape, jnp.float32) * s

    H = hidden
    # NOTE: single combined LSTM bias per layer (assumes PyTorch b_ih + b_hh pre-summed).
    p = {
        "embedding": rnd(0, (vocab, emb)),
        # forward AWD-LSTM, 2 layers
        "f0_wih": rnd(1, (emb, 4 * H)), "f0_whh": rnd(2, (H, 4 * H)), "f0_b": rnd(3, (1, 4 * H)),
        "f1_wih": rnd(4, (H, 4 * H)),   "f1_whh": rnd(5, (H, 4 * H)), "f1_b": rnd(6, (1, 4 * H)),
        # reverse AWD-LSTM, 2 layers
        "r0_wih": rnd(7, (emb, 4 * H)), "r0_whh": rnd(8, (H, 4 * H)), "r0_b": rnd(9, (1, 4 * H)),
        "r1_wih": rnd(10, (H, 4 * H)),  "r1_whh": rnd(11, (H, 4 * H)), "r1_b": rnd(12, (1, 4 * H)),
        # decoder: Conv1d(in=2H, out=F, k=3, pad=1) + Linear(F, n_classes)
        "conv_w": rnd(13, (cnn_filters, 2 * H, k)),  # PyTorch layout (C_out, C_in, K)
        "conv_b": rnd(14, (cnn_filters,)),
        "fc_w": rnd(15, (cnn_filters, n_classes)),
        "fc_b": jnp.zeros((n_classes,), jnp.float32),
    }
    return p


def fuse_params(p):
    """Build the fused / gate-interleaved weights used by the Pallas kernels."""
    H = p["f0_whh"].shape[0]
    fp = {
        "embedding": p["embedding"],
        # layer-0 input->gate weights (both directions), bf16 MXU operands
        "wih0_f": _to_slots(p["f0_wih"], H, 0).astype(jnp.bfloat16),   # (E, 8H)
        "wih0_r": _to_slots(p["r0_wih"], H, 1).astype(jnp.bfloat16),   # (E, 8H)
        "b0_all": _to_slots(p["f0_b"], H, 0) + _to_slots(p["r0_b"], H, 1),   # (1, 8H)
        # layer-0 recurrent (block-diagonal over directions)
        "whh0_all": _combine_rows(p["f0_whh"], p["r0_whh"], H),        # (2H, 8H)
        # layer-1 fused input+recurrent (rows: [h0_f, h0_r, h1_f, h1_r])
        "w1_all": jnp.concatenate(
            [_combine_rows(p["f1_wih"], p["r1_wih"], H),
             _combine_rows(p["f1_whh"], p["r1_whh"], H)], axis=0),     # (4H, 8H)
        "b1_all": _to_slots(p["f1_b"], H, 0) + _to_slots(p["r1_b"], H, 1),
        # decoder: conv taps (2H, F) per kernel offset, bf16 operands
        "conv_taps": [jnp.transpose(p["conv_w"][:, :, k]).astype(jnp.bfloat16)
                      for k in range(p["conv_w"].shape[-1])],
        "conv_b": p["conv_b"].reshape(1, -1).astype(jnp.float32),
        "fc_w": p["fc_w"].astype(jnp.bfloat16),
        "fc_b": p["fc_b"].reshape(1, -1).astype(jnp.float32),
    }
    return fp


def model_forward(params, inp, seq_len):
    # TODO(synk): seq_len accepted but unused — no ragged-sequence masking/packing.
    del seq_len
    inp = inp.astype(jnp.int32)                                   # inp.long()
    H = params["f0_whh"].shape[0]
    T, B = inp.shape
    E = params["embedding"].shape[1]
    fp = fuse_params(params)

    # Embedding gather + single time flip for the reverse direction (glue).
    emb = jnp.take(fp["embedding"], inp, axis=0)                  # (T, B, E)
    emb_rev = jnp.flip(emb, axis=0)                               # (T, B, E)

    # Hoisted layer-0 input->gate matmul for both directions (one parallel matmul).
    g_all = gate_precompute(emb.reshape(T * B, E), emb_rev.reshape(T * B, E),
                            fp["wih0_f"], fp["wih0_r"], fp["b0_all"])
    g_all = g_all.reshape(T, B, 8 * H)

    # Fused bidirectional 2-layer LSTM scan; output is already
    # concat(fwd_l0 + fwd_l1, rev_l0 + rev_l1) in (T, B, 2H).
    feat = bilstm_scan(g_all, fp["whh0_all"], fp["w1_all"], fp["b1_all"])

    # Decoder: k=3 conv (pad=1) as three shifted matmuls + ReLU + Linear, one kernel.
    zeros = jnp.zeros((1, B, 2 * H), feat.dtype)
    x_prev = jnp.concatenate([zeros, feat[:-1]], axis=0).reshape(T * B, 2 * H)
    x_next = jnp.concatenate([feat[1:], zeros], axis=0).reshape(T * B, 2 * H)
    x_cent = feat.reshape(T * B, 2 * H)
    logits = decoder_apply(x_prev, x_cent, x_next,
                           fp["conv_taps"][0], fp["conv_taps"][1], fp["conv_taps"][2],
                           fp["conv_b"], fp["fc_w"], fp["fc_b"])  # (T*B, n_classes)

    n_cls = logits.shape[-1]
    return jnp.transpose(logits.reshape(T, B, n_cls), (1, 0, 2))  # (B, T, n_classes)


# ----------------------------------------------------------------------------
if __name__ == "__main__":
    T, B = 8, 2
    VOCAB, EMB, HIDDEN, FILTERS, NCLS = 25, 32, 16, 32, 8

    key = jax.random.PRNGKey(0)
    k_param, k_inp = jax.random.split(key)

    params = init_params(k_param, vocab=VOCAB, emb=EMB, hidden=HIDDEN,
                         cnn_filters=FILTERS, n_classes=NCLS)

    inp = jax.random.randint(k_inp, (T, B), 0, VOCAB, dtype=jnp.int32)  # (T, B) tokens
    seq_len = jnp.full((B,), T, dtype=jnp.int32)

    out = jax.jit(model_forward)(params, inp, seq_len)
    out = jax.block_until_ready(out)

    assert out.shape == (B, T, NCLS), out.shape
    print("KERNEL_OK")
</pallas_src>

<mosaic_0001>
module attributes {stable_mosaic.version = 11 : i64} {
  func.func @gate_precompute_kernel(%arg0: i32, %arg1: memref<16x32xf32, #tpu.memory_space<vmem>>, %arg2: memref<16x32xf32, #tpu.memory_space<vmem>>, %arg3: memref<32x128xbf16, #tpu.memory_space<vmem>>, %arg4: memref<32x128xbf16, #tpu.memory_space<vmem>>, %arg5: memref<1x128xf32, #tpu.memory_space<vmem>>, %arg6: memref<16x128xf32, #tpu.memory_space<vmem>>) attributes {dimension_semantics = [#tpu.dimension_semantics<parallel>], iteration_bounds = array<i64: 1>, scalar_prefetch = 0 : i64, scratch_operands = 0 : i64, tpu.core_type = #tpu.core_type<tc>, window_params = [{transform_indices = @transform_0, window_bounds = array<i64: 16, 32>}, {transform_indices = @transform_1, window_bounds = array<i64: 16, 32>}, {pipeline_mode = #tpu.pipeline_mode<synchronous>, transform_indices = @transform_2, window_bounds = array<i64: 32, 128>}, {pipeline_mode = #tpu.pipeline_mode<synchronous>, transform_indices = @transform_3, window_bounds = array<i64: 32, 128>}, {pipeline_mode = #tpu.pipeline_mode<synchronous>, transform_indices = @transform_4, window_bounds = array<i64: 1, 128>}, {transform_indices = @transform_5, window_bounds = array<i64: 16, 128>}]} {
    %c0 = arith.constant 0 : index
    %c0_0 = arith.constant 0 : index
    %0 = vector.load %arg1[%c0, %c0_0] : memref<16x32xf32, #tpu.memory_space<vmem>>, vector<16x32xf32>
    %1 = arith.truncf %0 : vector<16x32xf32> to vector<16x32xbf16>
    %c0_1 = arith.constant 0 : index
    %c0_2 = arith.constant 0 : index
    %2 = vector.load %arg2[%c0_1, %c0_2] : memref<16x32xf32, #tpu.memory_space<vmem>>, vector<16x32xf32>
    %3 = arith.truncf %2 : vector<16x32xf32> to vector<16x32xbf16>
    %c0_3 = arith.constant 0 : index
    %c0_4 = arith.constant 0 : index
    %4 = vector.load %arg3[%c0_3, %c0_4] : memref<32x128xbf16, #tpu.memory_space<vmem>>, vector<32x128xbf16>
    %cst = arith.constant dense<0.000000e+00> : vector<16x128xf32>
    %5 = tpu.matmul %1, %4, %cst {dimension_numbers = #tpu.dot_dimension_numbers<[1], [0], [0], [1], [0, 0, 1, 1], [], []>} : vector<16x32xbf16>, vector<32x128xbf16>, vector<16x128xf32> -> vector<16x128xf32>
    %c0_5 = arith.constant 0 : index
    %c0_6 = arith.constant 0 : index
    %6 = vector.load %arg4[%c0_5, %c0_6] : memref<32x128xbf16, #tpu.memory_space<vmem>>, vector<32x128xbf16>
    %cst_7 = arith.constant dense<0.000000e+00> : vector<16x128xf32>
    %7 = tpu.matmul %3, %6, %cst_7 {dimension_numbers = #tpu.dot_dimension_numbers<[1], [0], [0], [1], [0, 0, 1, 1], [], []>} : vector<16x32xbf16>, vector<32x128xbf16>, vector<16x128xf32> -> vector<16x128xf32>
    %8 = arith.addf %5, %7 : vector<16x128xf32>
    %c0_8 = arith.constant 0 : index
    %c0_9 = arith.constant 0 : index
    %9 = vector.load %arg5[%c0_8, %c0_9] : memref<1x128xf32, #tpu.memory_space<vmem>>, vector<1x128xf32>
    %10 = vector.broadcast %9 : vector<1x128xf32> to vector<16x128xf32>
    %11 = arith.addf %8, %10 : vector<16x128xf32>
    %c0_10 = arith.constant 0 : index
    %c0_11 = arith.constant 0 : index
    %12 = vector.load %arg6[%c0_10, %c0_11] : memref<16x128xf32, #tpu.memory_space<vmem>>, vector<16x128xf32>
    tpu.vector_store %arg6[%c0_10, %c0_11], %11 {strides = array<i32>} : memref<16x128xf32, #tpu.memory_space<vmem>>, vector<16x128xf32>,
    return
  }
  func.func @transform_0(%arg0: i32) -> (i32, i32) {
    %c0_i32 = arith.constant 0 : i32
    %c0_i32_0 = arith.constant 0 : i32
    return %arg0, %c0_i32 : i32, i32
  }
  func.func @transform_1(%arg0: i32) -> (i32, i32) {
    %c0_i32 = arith.constant 0 : i32
    %c0_i32_0 = arith.constant 0 : i32
    return %arg0, %c0_i32 : i32, i32
  }
  func.func @transform_2(%arg0: i32) -> (i32, i32) {
    %c0_i32 = arith.constant 0 : i32
    %c0_i32_0 = arith.constant 0 : i32
    %c0_i32_1 = arith.constant 0 : i32
    return %c0_i32, %c0_i32_0 : i32, i32
  }
  func.func @transform_3(%arg0: i32) -> (i32, i32) {
    %c0_i32 = arith.constant 0 : i32
    %c0_i32_0 = arith.constant 0 : i32
    %c0_i32_1 = arith.constant 0 : i32
    return %c0_i32, %c0_i32_0 : i32, i32
  }
  func.func @transform_4(%arg0: i32) -> (i32, i32) {
    %c0_i32 = arith.constant 0 : i32
    %c0_i32_0 = arith.constant 0 : i32
    %c0_i32_1 = arith.constant 0 : i32
    return %c0_i32, %c0_i32_0 : i32, i32
  }
  func.func @transform_5(%arg0: i32) -> (i32, i32) {
    %c0_i32 = arith.constant 0 : i32
    %c0_i32_0 = arith.constant 0 : i32
    return %arg0, %c0_i32 : i32, i32
  }
}

module attributes {stable_mosaic.version = 11 : i64} {
  func.func @bilstm_scan_kernel(%arg0: i32, %arg1: memref<1x2x128xf32, #tpu.memory_space<vmem>>, %arg2: memref<32x128xf32, #tpu.memory_space<vmem>>, %arg3: memref<64x128xf32, #tpu.memory_space<vmem>>, %arg4: memref<1x128xf32, #tpu.memory_space<vmem>>, %arg5: memref<8x2x32xf32, #tpu.memory_space<vmem>>, %arg6: memref<2x32xf32, #tpu.memory_space<vmem>>, %arg7: memref<2x32xf32, #tpu.memory_space<vmem>>, %arg8: memref<2x32xf32, #tpu.memory_space<vmem>>, %arg9: memref<2x32xf32, #tpu.memory_space<vmem>>) attributes {dimension_semantics = [#tpu.dimension_semantics<arbitrary>], iteration_bounds = array<i64: 8>, scalar_prefetch = 0 : i64, scratch_operands = 4 : i64, tpu.core_type = #tpu.core_type<tc>, window_params = [{transform_indices = @transform_0, window_bounds = array<i64: 1, 2, 128>}, {pipeline_mode = #tpu.pipeline_mode<synchronous>, transform_indices = @transform_1, window_bounds = array<i64: 32, 128>}, {pipeline_mode = #tpu.pipeline_mode<synchronous>, transform_indices = @transform_2, window_bounds = array<i64: 64, 128>}, {pipeline_mode = #tpu.pipeline_mode<synchronous>, transform_indices = @transform_3, window_bounds = array<i64: 1, 128>}, {pipeline_mode = #tpu.pipeline_mode<synchronous>, transform_indices = @transform_4, window_bounds = array<i64: 8, 2, 32>}]} {
    %c0_i32 = arith.constant 0 : i32
    %0 = arith.cmpi eq, %arg0, %c0_i32 : i32
    %1 = arith.extui %0 : i1 to i32
    %c0_i32_0 = arith.constant 0 : i32
    %2 = arith.cmpi ne, %1, %c0_i32_0 : i32
    scf.if %2 {
      %cst_35 = arith.constant 0.000000e+00 : f32
      %84 = vector.broadcast %cst_35 : f32 to vector<2x32xf32>
      %c0_36 = arith.constant 0 : index
      %c0_37 = arith.constant 0 : index
      %85 = vector.load %arg6[%c0_36, %c0_37] : memref<2x32xf32, #tpu.memory_space<vmem>>, vector<2x32xf32>
      tpu.vector_store %arg6[%c0_36, %c0_37], %84 {strides = array<i32>} : memref<2x32xf32, #tpu.memory_space<vmem>>, vector<2x32xf32>,
      %cst_38 = arith.constant 0.000000e+00 : f32
      %86 = vector.broadcast %cst_38 : f32 to vector<2x32xf32>
      %c0_39 = arith.constant 0 : index
      %c0_40 = arith.constant 0 : index
      %87 = vector.load %arg7[%c0_39, %c0_40] : memref<2x32xf32, #tpu.memory_space<vmem>>, vector<2x32xf32>
      tpu.vector_store %arg7[%c0_39, %c0_40], %86 {strides = array<i32>} : memref<2x32xf32, #tpu.memory_space<vmem>>, vector<2x32xf32>,
      %cst_41 = arith.constant 0.000000e+00 : f32
      %88 = vector.broadcast %cst_41 : f32 to vector<2x32xf32>
      %c0_42 = arith.constant 0 : index
      %c0_43 = arith.constant 0 : index
      %89 = vector.load %arg8[%c0_42, %c0_43] : memref<2x32xf32, #tpu.memory_space<vmem>>, vector<2x32xf32>
      tpu.vector_store %arg8[%c0_42, %c0_43], %88 {strides = array<i32>} : memref<2x32xf32, #tpu.memory_space<vmem>>, vector<2x32xf32>,
      %cst_44 = arith.constant 0.000000e+00 : f32
      %90 = vector.broadcast %cst_44 : f32 to vector<2x32xf32>
      %c0_45 = arith.constant 0 : index
      %c0_46 = arith.constant 0 : index
      %91 = vector.load %arg9[%c0_45, %c0_46] : memref<2x32xf32, #tpu.memory_space<vmem>>, vector<2x32xf32>
      tpu.vector_store %arg9[%c0_45, %c0_46], %90 {strides = array<i32>} : memref<2x32xf32, #tpu.memory_space<vmem>>, vector<2x32xf32>,
    } else {
    }
    %c0 = arith.constant 0 : index
    %c0_1 = arith.constant 0 : index
    %c0_2 = arith.constant 0 : index
    %3 = vector.load %arg1[%c0, %c0_1, %c0_2] : memref<1x2x128xf32, #tpu.memory_space<vmem>>, vector<1x2x128xf32>
    %4 = vector.shape_cast %3 : vector<1x2x128xf32> to vector<2x128xf32>
    %c0_3 = arith.constant 0 : index
    %c0_4 = arith.constant 0 : index
    %5 = vector.load %arg6[%c0_3, %c0_4] : memref<2x32xf32, #tpu.memory_space<vmem>>, vector<2x32xf32>
    %c0_5 = arith.constant 0 : index
    %c0_6 = arith.constant 0 : index
    %6 = vector.load %arg2[%c0_5, %c0_6] : memref<32x128xf32, #tpu.memory_space<vmem>>, vector<32x128xf32>
    %cst = arith.constant dense<0.000000e+00> : vector<2x128xf32>
    %7 = tpu.matmul %5, %6, %cst {dimension_numbers = #tpu.dot_dimension_numbers<[1], [0], [0], [1], [0, 0, 1, 1], [], []>} : vector<2x32xf32>, vector<32x128xf32>, vector<2x128xf32> -> vector<2x128xf32>
    %8 = arith.addf %4, %7 : vector<2x128xf32>
    %c0_7 = arith.constant 0 : index
    %c0_8 = arith.constant 0 : index
    %9 = vector.load %arg7[%c0_7, %c0_8] : memref<2x32xf32, #tpu.memory_space<vmem>>, vector<2x32xf32>
    %10 = vector.extract_strided_slice %8 {offsets = [0, 0], sizes = [2, 32], strides = [1, 1]} : vector<2x128xf32> to vector<2x32xf32>
    %11 = arith.negf %10 : vector<2x32xf32>
    %12 = math.exp %11 : vector<2x32xf32>
    %cst_9 = arith.constant 1.000000e+00 : f32
    %13 = vector.broadcast %cst_9 : f32 to vector<2x32xf32>
    %14 = arith.addf %13, %12 : vector<2x32xf32>
    %15 = arith.divf %13, %14 : vector<2x32xf32>
    %16 = vector.extract_strided_slice %8 {offsets = [0, 32], sizes = [2, 32], strides = [1, 1]} : vector<2x128xf32> to vector<2x32xf32>
    %17 = arith.negf %16 : vector<2x32xf32>
    %18 = math.exp %17 : vector<2x32xf32>
    %cst_10 = arith.constant 1.000000e+00 : f32
    %19 = vector.broadcast %cst_10 : f32 to vector<2x32xf32>
    %20 = arith.addf %19, %18 : vector<2x32xf32>
    %21 = arith.divf %19, %20 : vector<2x32xf32>
    %22 = vector.extract_strided_slice %8 {offsets = [0, 64], sizes = [2, 32], strides = [1, 1]} : vector<2x128xf32> to vector<2x32xf32>
    %23 = math.tanh %22 : vector<2x32xf32>
    %24 = vector.extract_strided_slice %8 {offsets = [0, 96], sizes = [2, 32], strides = [1, 1]} : vector<2x128xf32> to vector<2x32xf32>
    %25 = arith.negf %24 : vector<2x32xf32>
    %26 = math.exp %25 : vector<2x32xf32>
    %cst_11 = arith.constant 1.000000e+00 : f32
    %27 = vector.broadcast %cst_11 : f32 to vector<2x32xf32>
    %28 = arith.addf %27, %26 : vector<2x32xf32>
    %29 = arith.divf %27, %28 : vector<2x32xf32>
    %30 = arith.mulf %21, %9 : vector<2x32xf32>
    %31 = arith.mulf %15, %23 : vector<2x32xf32>
    %32 = arith.addf %30, %31 : vector<2x32xf32>
    %33 = math.tanh %32 : vector<2x32xf32>
    %34 = arith.mulf %29, %33 : vector<2x32xf32>
    %c0_12 = arith.constant 0 : index
    %c0_13 = arith.constant 0 : index
    %35 = vector.load %arg6[%c0_12, %c0_13] : memref<2x32xf32, #tpu.memory_space<vmem>>, vector<2x32xf32>
    tpu.vector_store %arg6[%c0_12, %c0_13], %34 {strides = array<i32>} : memref<2x32xf32, #tpu.memory_space<vmem>>, vector<2x32xf32>,
    %c0_14 = arith.constant 0 : index
    %c0_15 = arith.constant 0 : index
    %36 = vector.load %arg7[%c0_14, %c0_15] : memref<2x32xf32, #tpu.memory_space<vmem>>, vector<2x32xf32>
    tpu.vector_store %arg7[%c0_14, %c0_15], %32 {strides = array<i32>} : memref<2x32xf32, #tpu.memory_space<vmem>>, vector<2x32xf32>,
    %c0_16 = arith.constant 0 : index
    %c0_17 = arith.constant 0 : index
    %37 = vector.load %arg8[%c0_16, %c0_17] : memref<2x32xf32, #tpu.memory_space<vmem>>, vector<2x32xf32>
    %38 = tpu.concatenate %34, %37 in 1 : vector<2x32xf32>, vector<2x32xf32> -> vector<2x64xf32>
    %c0_18 = arith.constant 0 : index
    %c0_19 = arith.constant 0 : index
    %39 = vector.load %arg3[%c0_18, %c0_19] : memref<64x128xf32, #tpu.memory_space<vmem>>, vector<64x128xf32>
    %cst_20 = arith.constant dense<0.000000e+00> : vector<2x128xf32>
    %40 = tpu.matmul %38, %39, %cst_20 {dimension_numbers = #tpu.dot_dimension_numbers<[1], [0], [0], [1], [0, 0, 1, 1], [], []>} : vector<2x64xf32>, vector<64x128xf32>, vector<2x128xf32> -> vector<2x128xf32>
    %c0_21 = arith.constant 0 : index
    %c0_22 = arith.constant 0 : index
    %41 = vector.load %arg4[%c0_21, %c0_22] : memref<1x128xf32, #tpu.memory_space<vmem>>, vector<1x128xf32>
    %42 = vector.broadcast %41 : vector<1x128xf32> to vector<2x128xf32>
    %43 = arith.addf %40, %42 : vector<2x128xf32>
    %c0_23 = arith.constant 0 : index
    %c0_24 = arith.constant 0 : index
    %44 = vector.load %arg9[%c0_23, %c0_24] : memref<2x32xf32, #tpu.memory_space<vmem>>, vector<2x32xf32>
    %45 = vector.extract_strided_slice %43 {offsets = [0, 0], sizes = [2, 32], strides = [1, 1]} : vector<2x128xf32> to vector<2x32xf32>
    %46 = arith.negf %45 : vector<2x32xf32>
    %47 = math.exp %46 : vector<2x32xf32>
    %cst_25 = arith.constant 1.000000e+00 : f32
    %48 = vector.broadcast %cst_25 : f32 to vector<2x32xf32>
    %49 = arith.addf %48, %47 : vector<2x32xf32>
    %50 = arith.divf %48, %49 : vector<2x32xf32>
    %51 = vector.extract_strided_slice %43 {offsets = [0, 32], sizes = [2, 32], strides = [1, 1]} : vector<2x128xf32> to vector<2x32xf32>
    %52 = arith.negf %51 : vector<2x32xf32>
    %53 = math.exp %52 : vector<2x32xf32>
    %cst_26 = arith.constant 1.000000e+00 : f32
    %54 = vector.broadcast %cst_26 : f32 to vector<2x32xf32>
    %55 = arith.addf %54, %53 : vector<2x32xf32>
    %56 = arith.divf %54, %55 : vector<2x32xf32>
    %57 = vector.extract_strided_slice %43 {offsets = [0, 64], sizes = [2, 32], strides = [1, 1]} : vector<2x128xf32> to vector<2x32xf32>
    %58 = math.tanh %57 : vector<2x32xf32>
    %59 = vector.extract_strided_slice %43 {offsets = [0, 96], sizes = [2, 32], strides = [1, 1]} : vector<2x128xf32> to vector<2x32xf32>
    %60 = arith.negf %59 : vector<2x32xf32>
    %61 = math.exp %60 : vector<2x32xf32>
    %cst_27 = arith.constant 1.000000e+00 : f32
    %62 = vector.broadcast %cst_27 : f32 to vector<2x32xf32>
    %63 = arith.addf %62, %61 : vector<2x32xf32>
    %64 = arith.divf %62, %63 : vector<2x32xf32>
    %65 = arith.mulf %56, %44 : vector<2x32xf32>
    %66 = arith.mulf %50, %58 : vector<2x32xf32>
    %67 = arith.addf %65, %66 : vector<2x32xf32>
    %68 = math.tanh %67 : vector<2x32xf32>
    %69 = arith.mulf %64, %68 : vector<2x32xf32>
    %c0_28 = arith.constant 0 : index
    %c0_29 = arith.constant 0 : index
    %70 = vector.load %arg8[%c0_28, %c0_29] : memref<2x32xf32, #tpu.memory_space<vmem>>, vector<2x32xf32>
    tpu.vector_store %arg8[%c0_28, %c0_29], %69 {strides = array<i32>} : memref<2x32xf32, #tpu.memory_space<vmem>>, vector<2x32xf32>,
    %c0_30 = arith.constant 0 : index
    %c0_31 = arith.constant 0 : index
    %71 = vector.load %arg9[%c0_30, %c0_31] : memref<2x32xf32, #tpu.memory_space<vmem>>, vector<2x32xf32>
    tpu.vector_store %arg9[%c0_30, %c0_31], %67 {strides = array<i32>} : memref<2x32xf32, #tpu.memory_space<vmem>>, vector<2x32xf32>,
    %72 = arith.addf %34, %69 : vector<2x32xf32>
    %73 = vector.extract_strided_slice %72 {offsets = [0, 0], sizes = [2, 16], strides = [1, 1]} : vector<2x32xf32> to vector<2x16xf32>
    %74 = arith.index_cast %arg0 : i32 to index
    %c0_32 = arith.constant 0 : index
    %c0_33 = arith.constant 0 : index
    %75 = vector.load %arg5[%74, %c0_32, %c0_33] : memref<8x2x32xf32, #tpu.memory_space<vmem>>, vector<1x2x16xf32>
    %76 = vector.shape_cast %75 : vector<1x2x16xf32> to vector<2x16xf32>
    %77 = vector.shape_cast %73 : vector<2x16xf32> to vector<1x2x16xf32>
    tpu.vector_store %arg5[%74, %c0_32, %c0_33], %77 {strides = array<i32>} : memref<8x2x32xf32, #tpu.memory_space<vmem>>, vector<1x2x16xf32>,
    %78 = vector.extract_strided_slice %72 {offsets = [0, 16], sizes = [2, 16], strides = [1, 1]} : vector<2x32xf32> to vector<2x16xf32>
    %c7_i32 = arith.constant 7 : i32
    %79 = arith.subi %c7_i32, %arg0 : i32
    %80 = arith.index_cast %79 : i32 to index
    %c0_34 = arith.constant 0 : index
    %c16 = arith.constant 16 : index
    %81 = vector.load %arg5[%80, %c0_34, %c16] : memref<8x2x32xf32, #tpu.memory_space<vmem>>, vector<1x2x16xf32>
    %82 = vector.shape_cast %81 : vector<1x2x16xf32> to vector<2x16xf32>
    %83 = vector.shape_cast %78 : vector<2x16xf32> to vector<1x2x16xf32>
    tpu.vector_store %arg5[%80, %c0_34, %c16], %83 {strides = array<i32>} : memref<8x2x32xf32, #tpu.memory_space<vmem>>, vector<1x2x16xf32>,
    return
  }
  func.func @transform_0(%arg0: i32) -> (i32, i32, i32) {
    %c0_i32 = arith.constant 0 : i32
    %c0_i32_0 = arith.constant 0 : i32
    %c0_i32_1 = arith.constant 0 : i32
    return %arg0, %c0_i32, %c0_i32_0 : i32, i32, i32
  }
  func.func @transform_1(%arg0: i32) -> (i32, i32) {
    %c0_i32 = arith.constant 0 : i32
    %c0_i32_0 = arith.constant 0 : i32
    %c0_i32_1 = arith.constant 0 : i32
    return %c0_i32, %c0_i32_0 : i32, i32
  }
  func.func @transform_2(%arg0: i32) -> (i32, i32) {
    %c0_i32 = arith.constant 0 : i32
    %c0_i32_0 = arith.constant 0 : i32
    %c0_i32_1 = arith.constant 0 : i32
    return %c0_i32, %c0_i32_0 : i32, i32
  }
  func.func @transform_3(%arg0: i32) -> (i32, i32) {
    %c0_i32 = arith.constant 0 : i32
    %c0_i32_0 = arith.constant 0 : i32
    %c0_i32_1 = arith.constant 0 : i32
    return %c0_i32, %c0_i32_0 : i32, i32
  }
  func.func @transform_4(%arg0: i32) -> (i32, i32, i32) {
    %c0_i32 = arith.constant 0 : i32
    %c0_i32_0 = arith.constant 0 : i32
    %c0_i32_1 = arith.constant 0 : i32
    %c0_i32_2 = arith.constant 0 : i32
    return %c0_i32, %c0_i32_0, %c0_i32_1 : i32, i32, i32
  }
}

module attributes {stable_mosaic.version = 11 : i64} {
  func.func @decoder_kernel(%arg0: i32, %arg1: memref<16x32xf32, #tpu.memory_space<vmem>>, %arg2: memref<16x32xf32, #tpu.memory_space<vmem>>, %arg3: memref<16x32xf32, #tpu.memory_space<vmem>>, %arg4: memref<32x32xbf16, #tpu.memory_space<vmem>>, %arg5: memref<32x32xbf16, #tpu.memory_space<vmem>>, %arg6: memref<32x32xbf16, #tpu.memory_space<vmem>>, %arg7: memref<1x32xf32, #tpu.memory_space<vmem>>, %arg8: memref<32x8xbf16, #tpu.memory_space<vmem>>, %arg9: memref<1x8xf32, #tpu.memory_space<vmem>>, %arg10: memref<16x8xf32, #tpu.memory_space<vmem>>) attributes {dimension_semantics = [#tpu.dimension_semantics<parallel>], iteration_bounds = array<i64: 1>, scalar_prefetch = 0 : i64, scratch_operands = 0 : i64, tpu.core_type = #tpu.core_type<tc>, window_params = [{transform_indices = @transform_0, window_bounds = array<i64: 16, 32>}, {transform_indices = @transform_1, window_bounds = array<i64: 16, 32>}, {transform_indices = @transform_2, window_bounds = array<i64: 16, 32>}, {pipeline_mode = #tpu.pipeline_mode<synchronous>, transform_indices = @transform_3, window_bounds = array<i64: 32, 32>}, {pipeline_mode = #tpu.pipeline_mode<synchronous>, transform_indices = @transform_4, window_bounds = array<i64: 32, 32>}, {pipeline_mode = #tpu.pipeline_mode<synchronous>, transform_indices = @transform_5, window_bounds = array<i64: 32, 32>}, {pipeline_mode = #tpu.pipeline_mode<synchronous>, transform_indices = @transform_6, window_bounds = array<i64: 1, 32>}, {pipeline_mode = #tpu.pipeline_mode<synchronous>, transform_indices = @transform_7, window_bounds = array<i64: 32, 8>}, {pipeline_mode = #tpu.pipeline_mode<synchronous>, transform_indices = @transform_8, window_bounds = array<i64: 1, 8>}, {transform_indices = @transform_9, window_bounds = array<i64: 16, 8>}]} {
    %c0 = arith.constant 0 : index
    %c0_0 = arith.constant 0 : index
    %0 = vector.load %arg1[%c0, %c0_0] : memref<16x32xf32, #tpu.memory_space<vmem>>, vector<16x32xf32>
    %1 = arith.truncf %0 : vector<16x32xf32> to vector<16x32xbf16>
    %c0_1 = arith.constant 0 : index
    %c0_2 = arith.constant 0 : index
    %2 = vector.load %arg2[%c0_1, %c0_2] : memref<16x32xf32, #tpu.memory_space<vmem>>, vector<16x32xf32>
    %3 = arith.truncf %2 : vector<16x32xf32> to vector<16x32xbf16>
    %c0_3 = arith.constant 0 : index
    %c0_4 = arith.constant 0 : index
    %4 = vector.load %arg3[%c0_3, %c0_4] : memref<16x32xf32, #tpu.memory_space<vmem>>, vector<16x32xf32>
    %5 = arith.truncf %4 : vector<16x32xf32> to vector<16x32xbf16>
    %c0_5 = arith.constant 0 : index
    %c0_6 = arith.constant 0 : index
    %6 = vector.load %arg4[%c0_5, %c0_6] : memref<32x32xbf16, #tpu.memory_space<vmem>>, vector<32x32xbf16>
    %cst = arith.constant dense<0.000000e+00> : vector<16x32xf32>
    %7 = tpu.matmul %1, %6, %cst {dimension_numbers = #tpu.dot_dimension_numbers<[1], [0], [0], [1], [0, 0, 1, 1], [], []>} : vector<16x32xbf16>, vector<32x32xbf16>, vector<16x32xf32> -> vector<16x32xf32>
    %c0_7 = arith.constant 0 : index
    %c0_8 = arith.constant 0 : index
    %8 = vector.load %arg5[%c0_7, %c0_8] : memref<32x32xbf16, #tpu.memory_space<vmem>>, vector<32x32xbf16>
    %cst_9 = arith.constant dense<0.000000e+00> : vector<16x32xf32>
    %9 = tpu.matmul %3, %8, %cst_9 {dimension_numbers = #tpu.dot_dimension_numbers<[1], [0], [0], [1], [0, 0, 1, 1], [], []>} : vector<16x32xbf16>, vector<32x32xbf16>, vector<16x32xf32> -> vector<16x32xf32>
    %10 = arith.addf %7, %9 : vector<16x32xf32>
    %c0_10 = arith.constant 0 : index
    %c0_11 = arith.constant 0 : index
    %11 = vector.load %arg6[%c0_10, %c0_11] : memref<32x32xbf16, #tpu.memory_space<vmem>>, vector<32x32xbf16>
    %cst_12 = arith.constant dense<0.000000e+00> : vector<16x32xf32>
    %12 = tpu.matmul %5, %11, %cst_12 {dimension_numbers = #tpu.dot_dimension_numbers<[1], [0], [0], [1], [0, 0, 1, 1], [], []>} : vector<16x32xbf16>, vector<32x32xbf16>, vector<16x32xf32> -> vector<16x32xf32>
    %13 = arith.addf %10, %12 : vector<16x32xf32>
    %c0_13 = arith.constant 0 : index
    %c0_14 = arith.constant 0 : index
    %14 = vector.load %arg7[%c0_13, %c0_14] : memref<1x32xf32, #tpu.memory_space<vmem>>, vector<1x32xf32>
    %15 = vector.broadcast %14 : vector<1x32xf32> to vector<16x32xf32>
    %16 = arith.addf %13, %15 : vector<16x32xf32>
    %cst_15 = arith.constant 0.000000e+00 : f32
    %17 = vector.broadcast %cst_15 : f32 to vector<16x32xf32>
    %18 = arith.maximumf %16, %17 : vector<16x32xf32>
    %19 = arith.truncf %18 : vector<16x32xf32> to vector<16x32xbf16>
    %c0_16 = arith.constant 0 : index
    %c0_17 = arith.constant 0 : index
    %20 = vector.load %arg8[%c0_16, %c0_17] : memref<32x8xbf16, #tpu.memory_space<vmem>>, vector<32x8xbf16>
    %cst_18 = arith.constant dense<0.000000e+00> : vector<16x8xf32>
    %21 = tpu.matmul %19, %20, %cst_18 {dimension_numbers = #tpu.dot_dimension_numbers<[1], [0], [0], [1], [0, 0, 1, 1], [], []>} : vector<16x32xbf16>, vector<32x8xbf16>, vector<16x8xf32> -> vector<16x8xf32>
    %c0_19 = arith.constant 0 : index
    %c0_20 = arith.constant 0 : index
    %22 = vector.load %arg9[%c0_19, %c0_20] : memref<1x8xf32, #tpu.memory_space<vmem>>, vector<1x8xf32>
    %23 = vector.broadcast %22 : vector<1x8xf32> to vector<16x8xf32>
    %24 = arith.addf %21, %23 : vector<16x8xf32>
    %c0_21 = arith.constant 0 : index
    %c0_22 = arith.constant 0 : index
    %25 = vector.load %arg10[%c0_21, %c0_22] : memref<16x8xf32, #tpu.memory_space<vmem>>, vector<16x8xf32>
    tpu.vector_store %arg10[%c0_21, %c0_22], %24 {strides = array<i32>} : memref<16x8xf32, #tpu.memory_space<vmem>>, vector<16x8xf32>,
    return
  }
  func.func @transform_0(%arg0: i32) -> (i32, i32) {
    %c0_i32 = arith.constant 0 : i32
    %c0_i32_0 = arith.constant 0 : i32
    return %arg0, %c0_i32 : i32, i32
  }
  func.func @transform_1(%arg0: i32) -> (i32, i32) {
    %c0_i32 = arith.constant 0 : i32
    %c0_i32_0 = arith.constant 0 : i32
    return %arg0, %c0_i32 : i32, i32
  }
  func.func @transform_2(%arg0: i32) -> (i32, i32) {
    %c0_i32 = arith.constant 0 : i32
    %c0_i32_0 = arith.constant 0 : i32
    return %arg0, %c0_i32 : i32, i32
  }
  func.func @transform_3(%arg0: i32) -> (i32, i32) {
    %c0_i32 = arith.constant 0 : i32
    %c0_i32_0 = arith.constant 0 : i32
    %c0_i32_1 = arith.constant 0 : i32
    return %c0_i32, %c0_i32_0 : i32, i32
  }
  func.func @transform_4(%arg0: i32) -> (i32, i32) {
    %c0_i32 = arith.constant 0 : i32
    %c0_i32_0 = arith.constant 0 : i32
    %c0_i32_1 = arith.constant 0 : i32
    return %c0_i32, %c0_i32_0 : i32, i32
  }
  func.func @transform_5(%arg0: i32) -> (i32, i32) {
    %c0_i32 = arith.constant 0 : i32
    %c0_i32_0 = arith.constant 0 : i32
    %c0_i32_1 = arith.constant 0 : i32
    return %c0_i32, %c0_i32_0 : i32, i32
  }
  func.func @transform_6(%arg0: i32) -> (i32, i32) {
    %c0_i32 = arith.constant 0 : i32
    %c0_i32_0 = arith.constant 0 : i32
    %c0_i32_1 = arith.constant 0 : i32
    return %c0_i32, %c0_i32_0 : i32, i32
  }
  func.func @transform_7(%arg0: i32) -> (i32, i32) {
    %c0_i32 = arith.constant 0 : i32
    %c0_i32_0 = arith.constant 0 : i32
    %c0_i32_1 = arith.constant 0 : i32
    return %c0_i32, %c0_i32_0 : i32, i32
  }
  func.func @transform_8(%arg0: i32) -> (i32, i32) {
    %c0_i32 = arith.constant 0 : i32
    %c0_i32_0 = arith.constant 0 : i32
    %c0_i32_1 = arith.constant 0 : i32
    return %c0_i32, %c0_i32_0 : i32, i32
  }
  func.func @transform_9(%arg0: i32) -> (i32, i32) {
    %c0_i32 = arith.constant 0 : i32
    %c0_i32_0 = arith.constant 0 : i32
    return %arg0, %c0_i32 : i32, i32
  }
}

</mosaic_0001>

<bundles_post_ra>
// kernel: model_forward.3
= control target key start
LH: loop header
LB: loop body
LE: loop exit
PB: predicated region body
PF: predicated region fallthrough
CT: control target
= control target key end

     0   :  { %v198_v0 = vmov 0.0   ;;  %vm199_vm0 = vmmov 0   ;;  %vm47_vm1 = vcmask 261120   ;;  %s263_s3 = inlined_call_operand.vmem [shape: bf16[32,128], index: 3, kind: input, shape index: {}]   ;;  %s264_s2 = inlined_call_operand.vmem [shape: bf16[32,128], index: 2, kind: input, shape index: {}]   ;;  %s265_s1 = inlined_call_operand.vmem [shape: f32[16,32], index: 1, kind: input, shape index: {}]   ;;  %s266_s0 = inlined_call_operand.vmem [shape: f32[16,32], index: 0, kind: input, shape index: {}]   ;;  %s267_s4 = inlined_call_operand.vmem [shape: f32[1,128], index: 4, kind: input, shape index: {}]   ;;  %s268_s5 = inlined_call_operand.vmem [shape: f32[16,128], index: 5, kind: output, shape index: {}]  }
   0x1   :  { %176 = vmatprep.subr.bf16.mxu0 %v198_v0  ;;  %184 = vmatprep.subr.bf16.mxu1 %v198_v0  ;;  %v194_v1 = vld [vmem:[%s263_s3] sm:$0xff]   ;;  %v196_v3 = vld [vmem:[%s263_s3 + $0x8] sm:$0xff]  }
   0x2   :  { %v195_v2 = vld [vmem:[%s264_s2] sm:$0xff]   ;;  %180 = vmatprep.mubr.msk.bf16.mxu0 %vm199_vm0, %v198_v0  ;;  %188 = vmatprep.mubr.msk.bf16.mxu1 %vm199_vm0, %v198_v0  ;;  %v197_v4 = vld [vmem:[%s264_s2 + $0x8] sm:$0xff]  }
   0x3   :  { %177 = vmatpush3.bf16.msra.mxu0 %v194_v1  ;;  %185 = vmatpush3.bf16.msra.mxu1 %v195_v2  ;;  %v24_v5 = vld [vmem:[%s265_s1] sm:$0xff]  ;;  %v25_v6 = vld [vmem:[%s265_s1 + $0x8] sm:$0xff] }
   0x4   :  { %178 = vmatprep.subr.bf16.mxu0 %v198_v0  ;;  %186 = vmatprep.subr.bf16.mxu1 %v198_v0  ;;  %v21_v7 = vld [vmem:[%s266_s0] sm:$0xff]  ;;  %v26_v8 = vpack.c.bf16 %v25_v6, %v24_v5  ;;  %v22_v9 = vld [vmem:[%s266_s0 + $0x8] sm:$0xff] }
   0x5   :  { %v23_v10 = vpack.c.bf16 %v22_v9, %v21_v7  ;;  %v169_v13 = vld [vmem:[%s267_s4] ss:$0 sm:$0xff] }
   0x7   :  { %179 = vmatpush3.bf16.msra.mxu0 %v196_v3  ;;  %187 = vmatpush3.bf16.msra.mxu1 %v197_v4 }
   0xa   :  { %181 = vmatmul.mubr.msk.bf16.vlgmr.msra.gmra.mrb[0].mxu0 %vm47_vm1, %v26_v8  ;;  %189 = vmatmul.mubr.msk.bf16.vlgmr.msra.gmra.mrb[0].mxu1 %vm47_vm1, %v23_v10 }
  0xdd   :  { %v85_v11 = vpop.f32.mrb[0].mxu0  ;;  %v141_v12 = vpop.f32.mrb[0].mxu1 }
  0xde   :  { %v182_v14 = vpop.f32.mrb[1].mxu0  ;;  %v142_v15 = vadd.f32 %v141_v12, %v85_v11  ;;  %v190_v16 = vpop.f32.mrb[1].mxu1 }
  0xdf   :  { %v88_v17 = vpop.f32.mrb[2].mxu0  ;;  %v144_v18 = vpop.f32.mrb[2].mxu1 }
  0xe0   :  { %v183_v19 = vpop.f32.mrb[3].mxu0  ;;  %v155_v20 = vadd.f32 %v169_v13, %v142_v15  ;;  %v145_v21 = vadd.f32 %v144_v18, %v88_v17  ;;  %v191_v22 = vpop.f32.mrb[3].mxu1 }
  0xe2   :  { %157 = vst [vmem:[%s268_s5] sm:$0xff] %v155_v20  ;;  %v156_v23 = vadd.f32 %v169_v13, %v145_v21 }
  0xe4   :  { %158 = vst [vmem:[%s268_s5 + $0x8] sm:$0xff] %v156_v23 }

// kernel: model_forward.4
= control target key start
LH: loop header
LB: loop body
LE: loop exit
PB: predicated region body
PF: predicated region fallthrough
CT: control target
= control target key end

     0   :  { %s638_s15 = smov 0   ;;  %s722_s0 = inlined_call_operand.vmem [shape: f32[8,2,128], index: 0, kind: input, shape index: {}]   ;;  %s723_s1 = inlined_call_operand.vmem [shape: f32[32,128], index: 1, kind: input, shape index: {}]   ;;  %s724_s2 = inlined_call_operand.vmem [shape: f32[64,128], index: 2, kind: input, shape index: {}]   ;;  %s725_s3 = inlined_call_operand.vmem [shape: f32[1,128], index: 3, kind: input, shape index: {}]   ;;  %s726_s4 = inlined_call_operand.vmem [shape: f32[8,2,32], index: 4, kind: output, shape index: {}]  }
   0x1 LB: > { %s644_s16 = sadd.s32 4294967295, %s604_s15   ;;  %p493_p0 = scmp.ge.s32.totalorder %s604_s15, 1  ;;  %s604_s15 = sphi %s638_s15, %s14_s15  }
   0x2   : > { %p156_p1 = scmp.lt.s32.totalorder %s604_s15, 9 }
   0x4   : > { %p157_p2 = pnand %p493_p0, %p156_p1 }
   0x5   : > { %p176_p3 = scmp.lt.s32.totalorder (!%p157_p2), %s644_s16, 7  ;;  %p495_p4 = scmp.ne.s32.totalorder (!%p157_p2), %s644_s16, 0 }
   0x6   : > { %160 = sbr.rel (%p157_p2) target bundleno = 1443 (0x5a3), region = 36 }
   0xd   : > { %s177_s17 = scalar_select %p176_p3, %s644_s16, 7 }
   0xe   : > { %183 = sbr.rel (%p495_p4) target bundleno = 21 (0x15), region = 40  ;;  %vm184_vm0 = vcmask (!%p495_p4), 254976   ;;  %v606_v0 = vmov (!%p495_p4), 0.0  }
   0xf   : > { %s494_s18 = sshll.u32 %s177_s17, 1  ;;  %185 = vst.msk [vmem:[#allocation2] sm:$0x3] (!%p495_p4), %vm184_vm0, %v606_v0  ;;  %186 = vst.msk [vmem:[#allocation3] sm:$0x3] (!%p495_p4), %vm184_vm0, %v606_v0 }
  0x10   : > { %s179_s21 = scalar_lea.vmem %s722_s0, %s494_s18  ;;  %187 = vst.msk [vmem:[#allocation4] sm:$0x3] (!%p495_p4), %vm184_vm0, %v606_v0  ;;  %188 = vst.msk [vmem:[#allocation5] sm:$0x3] (!%p495_p4), %vm184_vm0, %v606_v0 }
  0x15 PF: > { %v191_v1 = vld [vmem:[%s723_s1] sm:$0xff]  ;;  %v192_v2 = vld [vmem:[%s723_s1 + $0x8] sm:$0xff]  ;;  %v193_v3 = vld [vmem:[%s723_s1 + $0x10] sm:$0xff]  ;;  %v607_v4 = vmov 0.0|0.0   ;;  %vm608_vm1 = vmmov 0   ;;  %v609_v7 = vmov 0.0  }
  0x16   : > { %549 = vmatprep.subr.bf16.mxu0 %v607_v4  ;;  %v550_v5 = vpack.c.bf16 %v192_v2, %v191_v1  ;;  %v194_v6 = vld [vmem:[%s723_s1 + $0x18] sm:$0xff]  ;;  %527 = vmatprep.mubr.msk.f32.mxu0 %vm608_vm1, %v609_v7  ;;  %v190_v9 = vld [vmem:[#allocation2] sm:$0x3]  ;;  %vm195_vm2 = vcmask 261120   ;;  %s610_s30 = smov 64   ;;  %s611_s5 = smov 32  }
  0x17   : > { %555 = vmatprep.subr.bf16.mxu1 %v607_v4  ;;  %546 = vmatprep.mubr.msk.f32.mxu1 %vm608_vm1, %v609_v7  ;;  %v553_v8 = vpack.c.bf16 %v194_v6, %v193_v3  ;;  %v189_v10 = vld [vmem:[%s179_s21] sm:$0x3]  ;;  %v270_v15 = vld [vmem:[#allocation3] sm:$0x3]  ;;  %v317_v27 = vld [vmem:[%s724_s2 + $0x8] sm:$0xff]  ;;  %vm303_vm3 = vcmask 254976  }
  0x18   : > { %551 = vmatpush3.bf16.msra.mxu0 %v550_v5  ;;  %v316_v26 = vld [vmem:[%s724_s2] sm:$0xff]  ;;  %v318_v28 = vld [vmem:[%s724_s2 + $0x10] sm:$0xff]  ;;  %v319_v30 = vld [vmem:[%s724_s2 + $0x18] sm:$0xff]  ;;  %vm331_vm4 = vcmask 523264   ;;  %s612_s26 = smov 96   ;;  %s453_s27 = ssub.s32 7, %s644_s16 }
  0x19   : > { %552 = vmatprep.subr.bf16.mxu0 %v607_v4  ;;  %v556_v29 = vpack.c.bf16 %v317_v27, %v316_v26  ;;  %v559_v31 = vpack.c.bf16 %v319_v30, %v318_v28  ;;  %v320_v32 = vld [vmem:[%s724_s2 + $0x20] sm:$0xff]  ;;  %v321_v33 = vld [vmem:[%s724_s2 + $0x28] sm:$0xff]  ;;  %v322_v35 = vld [vmem:[%s724_s2 + $0x30] sm:$0xff]  ;;  %s501_s28 = sshll.u32 %s644_s16, 1  ;;  %s502_s29 = sshll.u32 %s453_s27, 1  ;;  %vm451_vm5 = vcmask 123904  }
  0x1a   : > { %v562_v34 = vpack.c.bf16 %v321_v33, %v320_v32  ;;  %v323_v36 = vld [vmem:[%s724_s2 + $0x38] sm:$0xff]  ;;  %v310_v39 = vld [vmem:[#allocation4] sm:$0x3]  ;;  %v405_v40 = vld [vmem:[#allocation5] sm:$0x3]  ;;  %s450_s7 = scalar_lea.vmem %s726_s4, %s501_s28  ;;  %s455_s10 = scalar_lea.vmem %s726_s4, %s502_s29  ;;  %vm456_vm6 = vcmask 255104  }
  0x1b   : > { %557 = vmatpush3.bf16.msra.mxu1 %v556_v29  ;;  %v565_v38 = vpack.c.bf16 %v323_v36, %v322_v35  ;;  %v498_v46 = vld [vmem:[%s725_s3] ss:$0 sm:$0xff] }
  0x1c   : > { %554 = vmatpush3.bf16.msra.mxu0 %v553_v8  ;;  %558 = vmatprep.subr.bf16.mxu1 %v607_v4 }
  0x1f   : > { %528 = vmatmul.mubr.msk.f32.vlgmr.msra.gmra.mrb[0].mxu0 %vm195_vm2, %v190_v9  ;;  %560 = vmatpush3.bf16.msra.mxu1 %v559_v31 }
  0x20   : > { %561 = vmatprep.subr.bf16.mxu1 %v607_v4 }
  0x23   : > { %563 = vmatpush3.bf16.msra.mxu1 %v562_v34 }
  0x24   : > { %564 = vmatprep.subr.bf16.mxu1 %v607_v4 }
  0x27   : > { %566 = vmatpush3.bf16.msra.mxu1 %v565_v38 }
  0xf2   : > { %v265_v11 = vpop.f32.mrb[0].mxu0 }
  0xf3   : > { %v269_v12 = vadd.f32 %v265_v11, %v189_v10  ;;  %v529_v13 = vpop.f32.mrb[1].mxu0 }
  0xf5   : > { %582 = vtanh.f32 %v269_v12  ;;  %v497_v16 = vmul.f32 -1.442695, %v269_v12 }
  0xf7   : > { %584 = vpow2.f32 %v497_v16 }
  0xff   : > { %v583_v14 = vpop.eup %582 }
 0x100   : > { %284 = vrot.lane.b32.xlu0 %v583_v14, %s610_s30 }
 0x101   : > { %v585_v17 = vpop.eup %584 }
 0x102   : > { %v274_v18 = vadd.f32 1.0, %v585_v17 }
 0x104   : > { %279 = vrot.lane.b32.xlu0 %v270_v15, %s611_s5  ;;  %586 = vrcp.f32 %v274_v18 }
 0x10e   : > { %v587_v19 = vpop.eup %586 }
 0x172   : > { %v285_v20 = vpop.permute.xlu0 %284 }
 0x173   : > { %v287_v21 = vmul.f32 %v587_v19, %v285_v20 }
 0x175   : > { %289 = vrot.lane.b32.xlu1 %v287_v21, %s611_s5 }
 0x176   : > { %v280_v22 = vpop.permute.xlu0 %279 }
 0x177   : > { %v282_v23 = vmul.f32 %v587_v19, %v280_v22 }
 0x1e7   : > { %v290_v24 = vpop.permute.xlu1 %289 }
 0x1e8   : > { %v292_v25 = vadd.f32 %v290_v24, %v282_v23 }
 0x1ea   : > { %588 = vtanh.f32 %v292_v25 }
 0x1f4   : > { %v589_v37 = vpop.eup %588 }
 0x1f5   : > { %295 = vrot.lane.b32.xlu1 %v589_v37, %s610_s30 }
 0x1f9   : > { %312 = vrot.lane.b32.xlu1 %v310_v39, %s611_s5 }
 0x1fd   : > { %414 = vrot.lane.b32.xlu1 %v405_v40, %s611_s5 }
 0x267   : > { %v296_v41 = vpop.permute.xlu1 %295 }
 0x268   : > { %v298_v42 = vmul.f32 %v587_v19, %v296_v41 }
 0x26a   : > { %300 = vrot.lane.b32.xlu0 %v298_v42, %s611_s5 }
 0x26b   : > { %v313_v43 = vpop.permute.xlu1 %312 }
 0x26f   : > { %v415_v57 = vpop.permute.xlu1 %414 }
 0x2dc   : > { %v301_v44 = vpop.permute.xlu0 %300 }
 0x2dd   : > { %304 = vst.msk [vmem:[#allocation2] sm:$0x3] %vm303_vm3, %v301_v44  ;;  %v315_v45 = vsel %vm195_vm2, %v301_v44, %v313_v43 }
 0x2de   : > { %547 = vmatmul.mubr.msk.f32.vlgmr.msra.gmra.mrb[0].mxu1 %vm331_vm4, %v315_v45 }
 0x3b1   : > { %v401_v47 = vpop.f32.mrb[0].mxu1 }
 0x3b2   : > { %v402_v48 = vadd.f32 %v498_v46, %v401_v47  ;;  %v548_v49 = vpop.f32.mrb[1].mxu1 }
 0x3b4   : > { %590 = vtanh.f32 %v402_v48  ;;  %v500_v51 = vmul.f32 -1.442695, %v402_v48 }
 0x3b6   : > { %592 = vpow2.f32 %v500_v51 }
 0x3be   : > { %v591_v50 = vpop.eup %590 }
 0x3bf   : > { %419 = vrot.lane.b32.xlu0 %v591_v50, %s610_s30 }
 0x3c0   : > { %v593_v52 = vpop.eup %592 }
 0x3c1   : > { %v409_v53 = vadd.f32 1.0, %v593_v52 }
 0x3c3   : > { %594 = vrcp.f32 %v409_v53 }
 0x3cd   : > { %v595_v54 = vpop.eup %594 }
 0x3ce   : > { %v417_v58 = vmul.f32 %v595_v54, %v415_v57 }
 0x431   : > { %v420_v55 = vpop.permute.xlu0 %419 }
 0x432   : > { %v422_v56 = vmul.f32 %v595_v54, %v420_v55 }
 0x434   : > { %424 = vrot.lane.b32.xlu0 %v422_v56, %s611_s5 }
 0x4a6   : > { %v425_v59 = vpop.permute.xlu0 %424 }
 0x4a7   : > { %v427_v60 = vadd.f32 %v425_v59, %v417_v58 }
 0x4a9   : > { %596 = vtanh.f32 %v427_v60 }
 0x4b3   : > { %v597_v61 = vpop.eup %596 }
 0x4b4   : > { %430 = vrot.lane.b32.xlu1 %v597_v61, %s610_s30 }
 0x4b8   : > { %306 = vrot.lane.b32.xlu1 %v292_v25, %s612_s26 }
 0x4bc   : > { %440 = vrot.lane.b32.xlu1 %v427_v60, %s612_s26 }
 0x526   : > { %v431_v62 = vpop.permute.xlu1 %430 }
 0x527   : > { %v433_v63 = vmul.f32 %v595_v54, %v431_v62 }
 0x529   : > { %v444_v0 = vadd.f32 %v433_v63, %v298_v42 }
 0x52a   : > { %v307_v1 = vpop.permute.xlu1 %306 }
 0x52b   : > { %309 = vst.msk [vmem:[#allocation3] sm:$0x3] %vm303_vm3, %v307_v1  ;;  %446 = vrot.lane.b32.xlu0 %v444_v0, %s611_s5 }
 0x52e   : > { %v441_v2 = vpop.permute.xlu1 %440 }
 0x52f   : > { %443 = vst.msk [vmem:[#allocation5] sm:$0x3] %vm303_vm3, %v441_v2  ;;  %435 = vrot.lane.b32.xlu0 %v433_v63, %s611_s5 }
 0x59d   : > { %v447_v3 = vpop.permute.xlu0 %446 }
 0x59e   : > { %452 = vst.msk [vmem:[%s450_s7] sm:$0x3] %vm451_vm5, %v447_v3 }
 0x59f   : > { %457 = vst.msk [vmem:[%s455_s10] sm:$0x3] %vm456_vm6, %v447_v3 }
 0x5a1   : > { %v436_v4 = vpop.permute.xlu0 %435 }
 0x5a2   : > { %438 = vst.msk [vmem:[#allocation4] sm:$0x3] %vm303_vm3, %v436_v4 }
 0x5a3 PF: > { %s14_s15 = sadd.s32 1, %s604_s15  }
 0x5a4   : > { %p11_p5 = scmp.ge.s32.totalorder %s14_s15, 10  }
 0x5a6   :  { %13 = sbr.rel (!%p11_p5) target bundleno = 1 (0x1), region = 68 }

// kernel: model_forward.5
= control target key start
LH: loop header
LB: loop body
LE: loop exit
PB: predicated region body
PF: predicated region fallthrough
CT: control target
= control target key end

     0   :  { %v379_v0 = vmov 0.0   ;;  %vm380_vm0 = vmmov 0   ;;  %vm62_vm1 = vcmask 261120   ;;  %vm304_vm2 = vcmask 64512   ;;  %s493_s4 = inlined_call_operand.vmem [shape: bf16[32,32], index: 4, kind: input, shape index: {}]   ;;  %s494_s3 = inlined_call_operand.vmem [shape: bf16[32,32], index: 3, kind: input, shape index: {}]   ;;  %s495_s1 = inlined_call_operand.vmem [shape: f32[16,32], index: 1, kind: input, shape index: {}]   ;;  %s496_s0 = inlined_call_operand.vmem [shape: f32[16,32], index: 0, kind: input, shape index: {}]   ;;  %s497_s5 = inlined_call_operand.vmem [shape: bf16[32,32], index: 5, kind: input, shape index: {}]   ;;  %s498_s2 = inlined_call_operand.vmem [shape: f32[16,32], index: 2, kind: input, shape index: {}]   ;;  %s499_s7 = inlined_call_operand.vmem [shape: bf16[32,8], index: 7, kind: input, shape index: {}]   ;;  %s500_s6 = inlined_call_operand.vmem [shape: f32[1,32], index: 6, kind: input, shape index: {}]   ;;  %s501_s8 = inlined_call_operand.vmem [shape: f32[1,8], index: 8, kind: input, shape index: {}]   ;;  %s502_s9 = inlined_call_operand.vmem [shape: f32[16,8], index: 9, kind: output, shape index: {}]  }
   0x1   :  { %337 = vmatprep.subr.bf16.mxu0 %v379_v0  ;;  %345 = vmatprep.subr.bf16.mxu1 %v379_v0  ;;  %v371_v1 = vld [vmem:[%s493_s4] sm:$0xff]   ;;  %v373_v3 = vld [vmem:[%s493_s4 + $0x8] sm:$0xff]  }
   0x2   :  { %v372_v2 = vld [vmem:[%s494_s3] sm:$0xff]   ;;  %341 = vmatprep.mubr.msk.bf16.mxu0 %vm380_vm0, %v379_v0  ;;  %349 = vmatprep.mubr.msk.bf16.mxu1 %vm380_vm0, %v379_v0  ;;  %v374_v4 = vld [vmem:[%s494_s3 + $0x8] sm:$0xff]  }
   0x3   :  { %338 = vmatpush3.bf16.msra.mxu0 %v371_v1  ;;  %346 = vmatpush3.bf16.msra.mxu1 %v372_v2  ;;  %v36_v5 = vld [vmem:[%s495_s1] sm:$0xff]  ;;  %v37_v6 = vld [vmem:[%s495_s1 + $0x8] sm:$0xff] }
   0x4   :  { %339 = vmatprep.subr.bf16.mxu0 %v379_v0  ;;  %347 = vmatprep.subr.bf16.mxu1 %v379_v0  ;;  %v33_v7 = vld [vmem:[%s496_s0] sm:$0xff]  ;;  %v38_v8 = vpack.c.bf16 %v37_v6, %v36_v5  ;;  %v34_v9 = vld [vmem:[%s496_s0 + $0x8] sm:$0xff] }
   0x5   :  { %v35_v10 = vpack.c.bf16 %v34_v9, %v33_v7  ;;  %v375_v11 = vld [vmem:[%s497_s5] sm:$0xff]   ;;  %v376_v12 = vld [vmem:[%s497_s5 + $0x8] sm:$0xff]  }
   0x6   :  { %v39_v13 = vld [vmem:[%s498_s2] sm:$0xff]  ;;  %v40_v14 = vld [vmem:[%s498_s2 + $0x8] sm:$0xff] }
   0x7   :  { %340 = vmatpush3.bf16.msra.mxu0 %v373_v3  ;;  %348 = vmatpush3.bf16.msra.mxu1 %v374_v4  ;;  %v41_v15 = vpack.c.bf16 %v40_v14, %v39_v13  ;;  %v377_v16 = vld [vmem:[%s499_s7] sm:$0xff]   ;;  %v378_v17 = vld [vmem:[%s499_s7 + $0x8] sm:$0xff]  }
   0x8   :  { %353 = vmatprep.subr.bf16.mxu0 %v379_v0  ;;  %361 = vmatprep.subr.bf16.mxu1 %v379_v0  ;;  %v320_v29 = vld [vmem:[%s500_s6] ss:$0 sm:$0xff] }
   0x9   :  { %v321_v40 = vld [vmem:[%s501_s8] ss:$0 sm:$0xff] }
   0xa   :  { %342 = vmatmul.mubr.msk.bf16.vlgmr.msra.gmra.mrb[0].mxu0 %vm62_vm1, %v38_v8  ;;  %350 = vmatmul.mubr.msk.bf16.vlgmr.msra.gmra.mrb[0].mxu1 %vm62_vm1, %v35_v10 }
   0xb   :  { %354 = vmatpush3.bf16.msra.mxu0 %v375_v11  ;;  %357 = vmatprep.mubr.msk.bf16.mxu0 %vm380_vm0, %v379_v0 }
   0xc   :  { %355 = vmatprep.subr.bf16.mxu0 %v379_v0  ;;  %365 = vmatprep.mubr.msk.bf16.mxu1 %vm380_vm0, %v379_v0 }
   0xd   :  { %362 = vmatpush3.bf16.msra.mxu1 %v377_v16 }
   0xe   :  { %363 = vmatprep.subr.bf16.mxu1 %v379_v0 }
   0xf   :  { %356 = vmatpush3.bf16.msra.mxu0 %v376_v12 }
  0x11   :  { %364 = vmatpush3.bf16.msra.mxu1 %v378_v17 }
  0x12   :  { %358 = vmatmul.mubr.msk.bf16.vlgmr.msra.gmra.mrb[4].mxu0 %vm62_vm1, %v41_v15 }
  0xdd   :  { %v100_v18 = vpop.f32.mrb[0].mxu0  ;;  %v156_v19 = vpop.f32.mrb[0].mxu1 }
  0xde   :  { %v343_v20 = vpop.f32.mrb[1].mxu0  ;;  %v157_v21 = vadd.f32 %v156_v19, %v100_v18  ;;  %v351_v22 = vpop.f32.mrb[1].mxu1 }
  0xdf   :  { %v103_v23 = vpop.f32.mrb[2].mxu0  ;;  %v159_v24 = vpop.f32.mrb[2].mxu1 }
  0xe0   :  { %v344_v25 = vpop.f32.mrb[3].mxu0  ;;  %v160_v26 = vadd.f32 %v159_v24, %v103_v23  ;;  %v352_v27 = vpop.f32.mrb[3].mxu1 }
  0xe5   :  { %v216_v28 = vpop.f32.mrb[4].mxu0 }
  0xe6   :  { %v223_v30 = vadd.f32 %v216_v28, %v157_v21  ;;  %v359_v31 = vpop.f32.mrb[5].mxu0 }
  0xe7   :  { %v219_v32 = vpop.f32.mrb[6].mxu0 }
  0xe8   :  { %v232_v33 = vadd.f32 %v320_v29, %v223_v30  ;;  %v224_v34 = vadd.f32 %v219_v32, %v160_v26  ;;  %v360_v35 = vpop.f32.mrb[7].mxu0 }
  0xea   :  { %v233_v36 = vadd.f32 %v320_v29, %v224_v34  ;;  %v234_v37 = vmax.f32 %v232_v33, 0.0 }
  0xec   :  { %v235_v38 = vmax.f32 %v233_v36, 0.0 }
  0xee   :  { %v236_v39 = vpack.c.bf16 %v235_v38, %v234_v37 }
  0xf0   :  { %366 = vmatmul.mubr.msk.bf16.vlgmr.msra.gmra.mrb[4].mxu1 %vm62_vm1, %v236_v39 }
 0x1c3   :  { %v297_v41 = vpop.f32.mrb[4].mxu1 }
 0x1c4   :  { %v298_v42 = vadd.f32 %v321_v40, %v297_v41  ;;  %v367_v43 = vpop.f32.mrb[5].mxu1 }
 0x1c5   :  { %v300_v44 = vpop.f32.mrb[6].mxu1 }
 0x1c6   :  { %305 = vst.msk [vmem:[%s502_s9] sm:$0xff] %vm304_vm2, %v298_v42  ;;  %v301_v45 = vadd.f32 %v321_v40, %v300_v44  ;;  %v368_v46 = vpop.f32.mrb[7].mxu1 }
 0x1c8   :  { %306 = vst.msk [vmem:[%s502_s9 + $0x8] sm:$0xff] %vm304_vm2, %v301_v45 }

</bundles_post_ra>
